<compile_context>
chip_gen: v6e
topology: v6e:2x2x1
jax: 0.10.0
libtpu: 0.0.40
codegen_flags: <defaults>
</compile_context>

<pallas_src>
import math
import functools

import jax
import jax.numpy as jnp
from jax import lax
from jax.experimental import pallas as pl
from jax.experimental.pallas import tpu as pltpu


# ----------------------------- configuration --------------------------------
class Config:
    hidden_size = 32
    num_attention_heads = 4
    # mirrors: num_key_value_heads = max(1, num_attention_heads // 4)
    num_key_value_heads = max(1, num_attention_heads // 4)
    attention_probs_dropout_prob = 0.0  # eval-mode => identity anyway


# ------------------------------- kernel --------------------------------------
def gqa_kernel(x_ref, w_ref, b_ref, out_ref, *, n_heads, n_kv, head_dim, scale):
    """Fused GQA for one batch row (all heads).

    Block shapes seen by the kernel:
      x_ref   : (1, S, H)
      w_ref   : (H, all_head + 2*kv_head)   fused [Wq | Wk | Wv], resident
      b_ref   : (1, all_head + 2*kv_head)   fused [bq | bk | bv]
      out_ref : (1, S, all_head + 2*kv_head) fused [ctx | K | V] output slab
    """
    x = x_ref[0]                                   # (S, H)
    all_head = n_heads * head_dim
    kv_head = n_kv * head_dim
    qpkv = n_heads // n_kv

    # Single fused MXU matmul for Q|K|V (computed exactly once per batch row;
    # K/V are shared by every query head below).
    qkv = jnp.dot(x, w_ref[...], preferred_element_type=jnp.float32) + b_ref[...]

    # K|V slab of the projection occupies the SAME lane range in the fused
    # output -> one dense store (feeds past_key_value in the wrapper).
    out_ref[0, :, all_head:all_head + 2 * kv_head] = (
        qkv[:, all_head:all_head + 2 * kv_head].astype(out_ref.dtype))

    k = qkv[:, all_head:all_head + kv_head]        # (S, kv_head)
    v = qkv[:, all_head + kv_head:all_head + 2 * kv_head]

    # Per-head attention; static (unrolled) loop over a handful of heads.
    # Each head's context is stored straight into its lane window of the
    # fused output (no concatenate, one head live at a time).
    for h in range(n_heads):
        g = h // qpkv                              # GQA head sharing
        qh = qkv[:, h * head_dim:(h + 1) * head_dim]      # (S, D)
        kh = k[:, g * head_dim:(g + 1) * head_dim]        # (S, D)
        vh = v[:, g * head_dim:(g + 1) * head_dim]        # (S, D)

        # q @ k^T without an explicit transpose (contract last dims).
        scores = lax.dot_general(
            qh, kh, (((1,), (1,)), ((), ())),
            preferred_element_type=jnp.float32) * scale    # (S, S)

        # Softmax along the key axis (exact reciprocal keeps 1e-4 tolerance).
        m = jnp.max(scores, axis=-1, keepdims=True)
        e = jnp.exp(scores - m)
        denom = jnp.sum(e, axis=-1, keepdims=True)
        probs = e * pl.reciprocal(denom, approx=False)

        ctx_h = jnp.dot(probs, vh, preferred_element_type=jnp.float32)  # (S, D)
        out_ref[0, :, h * head_dim:(h + 1) * head_dim] = ctx_h.astype(out_ref.dtype)


# ------------------------------ wrapper ---------------------------------------
def gqa_forward(hidden_states, params, config):
    """Returns (context_layer, (key_layer, value_layer)) matching the PyTorch
    module's forward with attention_mask=None, head_mask=None,
    past_key_value=None, output_attentions=False (eval mode)."""
    B, S, H = hidden_states.shape
    n_heads = config.num_attention_heads
    n_kv = config.num_key_value_heads
    head_dim = H // n_heads
    # Guards (mirror the module's implicit assumptions).
    assert n_heads % n_kv == 0, "num_attention_heads must be divisible by num_key_value_heads"
    assert H == n_heads * head_dim, "hidden_size must be divisible by num_attention_heads"
    all_head = n_heads * head_dim
    kv_head = n_kv * head_dim
    fused_out = all_head + 2 * kv_head
    out_dtype = hidden_states.dtype

    # Pack [Wq | Wk | Wv] and biases once in the wrapper (constant-folded
    # under jit; Linear weights stored as (in, out)).
    w_fused = jnp.concatenate([params["wq"], params["wk"], params["wv"]], axis=1)
    b_fused = jnp.concatenate([params["bq"], params["bk"], params["bv"]]).reshape(1, fused_out)

    kernel = functools.partial(
        gqa_kernel, n_heads=n_heads, n_kv=n_kv, head_dim=head_dim,
        scale=1.0 / math.sqrt(head_dim))

    # NOTE: at larger batch, fold a Bt>1 tile of rows per grid step to amortize
    # the ~0.35 us per-step overhead (keep >=2 steps for v7x megacore).
    out = pl.pallas_call(
        kernel,
        out_shape=jax.ShapeDtypeStruct((B, S, fused_out), out_dtype),
        grid_spec=pltpu.PrefetchScalarGridSpec(
            num_scalar_prefetch=0,
            grid=(B,),
            in_specs=[
                # hidden_states: one batch row per grid step (full S, H block).
                pl.BlockSpec((1, S, H), lambda b: (b, 0, 0)),
                # Fused weight / bias: constant block index -> resident in VMEM
                # across the whole grid.
                pl.BlockSpec((H, fused_out), lambda b: (0, 0)),
                pl.BlockSpec((1, fused_out), lambda b: (0, 0)),
            ],
            out_specs=pl.BlockSpec((1, S, fused_out), lambda b: (b, 0, 0)),
        ),
        compiler_params=pltpu.CompilerParams(
            dimension_semantics=("parallel",)),
    )(hidden_states, w_fused, b_fused)

    # Slice the fused output slab.
    context_layer = out[:, :, :all_head]                       # (B, S, all_head)
    k_flat = out[:, :, all_head:all_head + kv_head]            # (B, S, kv_head)
    v_flat = out[:, :, all_head + kv_head:]                    # (B, S, kv_head)

    # past_key_value = (key_layer, value_layer), shape (B, n_kv, S, head_dim).
    key_layer = jnp.transpose(k_flat.reshape(B, S, n_kv, head_dim), (0, 2, 1, 3))
    value_layer = jnp.transpose(v_flat.reshape(B, S, n_kv, head_dim), (0, 2, 1, 3))

    return context_layer, (key_layer, value_layer)


# --------------------------- reference (plain JAX) ----------------------------
def gqa_reference(hidden_states, params, config):
    B, S, H = hidden_states.shape
    n_heads = config.num_attention_heads
    n_kv = config.num_key_value_heads
    head_dim = H // n_heads
    qpkv = n_heads // n_kv

    q = hidden_states @ params["wq"] + params["bq"]
    k = hidden_states @ params["wk"] + params["bk"]
    v = hidden_states @ params["wv"] + params["bv"]

    q = jnp.transpose(q.reshape(B, S, n_heads, head_dim), (0, 2, 1, 3))
    k = jnp.transpose(k.reshape(B, S, n_kv, head_dim), (0, 2, 1, 3))
    v = jnp.transpose(v.reshape(B, S, n_kv, head_dim), (0, 2, 1, 3))

    k_exp = jnp.repeat(k, qpkv, axis=1)
    v_exp = jnp.repeat(v, qpkv, axis=1)

    scores = jnp.einsum("bhqd,bhkd->bhqk", q, k_exp) / math.sqrt(head_dim)
    probs = jax.nn.softmax(scores, axis=-1)
    ctx = jnp.einsum("bhqk,bhkd->bhqd", probs, v_exp)
    ctx = jnp.transpose(ctx, (0, 2, 1, 3)).reshape(B, S, n_heads * head_dim)
    return ctx, k, v


# ---------------------------------- main --------------------------------------
if __name__ == "__main__":
    cfg = Config()
    B, S, H = 2, 8, cfg.hidden_size
    n_heads = cfg.num_attention_heads
    n_kv = cfg.num_key_value_heads
    head_dim = H // n_heads

    key = jax.random.PRNGKey(0)
    kx, kq, kkq, kk, kkk, kv, kkv = jax.random.split(key, 7)

    x = jax.random.normal(kx, (B, S, H), dtype=jnp.float32)

    # Deterministic parameter init (Linear weights stored as (in, out)).
    scale = 1.0 / math.sqrt(H)
    params = {
        "wq": jax.random.uniform(kq, (H, n_heads * head_dim), jnp.float32, -scale, scale),
        "bq": jax.random.uniform(kkq, (n_heads * head_dim,), jnp.float32, -scale, scale),
        "wk": jax.random.uniform(kk, (H, n_kv * head_dim), jnp.float32, -scale, scale),
        "bk": jax.random.uniform(kkk, (n_kv * head_dim,), jnp.float32, -scale, scale),
        "wv": jax.random.uniform(kv, (H, n_kv * head_dim), jnp.float32, -scale, scale),
        "bv": jax.random.uniform(kkv, (n_kv * head_dim,), jnp.float32, -scale, scale),
    }

    context, (key_layer, value_layer) = gqa_forward(x, params, cfg)
    context = jax.block_until_ready(context)

    ref_ctx, ref_k, ref_v = gqa_reference(x, params, cfg)
    assert context.shape == (B, S, H)
    assert key_layer.shape == (B, n_kv, S, head_dim)
    assert value_layer.shape == (B, n_kv, S, head_dim)
    assert jnp.allclose(context, ref_ctx, atol=1e-4, rtol=1e-4), "context mismatch vs reference"
    assert jnp.allclose(key_layer, ref_k, atol=1e-4, rtol=1e-4), "key_layer mismatch vs reference"
    assert jnp.allclose(value_layer, ref_v, atol=1e-4, rtol=1e-4), "value_layer mismatch vs reference"

    print("KERNEL_OK")
</pallas_src>

<mosaic_0001>
module attributes {stable_mosaic.version = 11 : i64} {
  func.func @gqa_kernel(%arg0: i32, %arg1: memref<1x8x32xf32, #tpu.memory_space<vmem>>, %arg2: memref<32x48xf32, #tpu.memory_space<vmem>>, %arg3: memref<1x48xf32, #tpu.memory_space<vmem>>, %arg4: memref<1x8x48xf32, #tpu.memory_space<vmem>>) attributes {dimension_semantics = [#tpu.dimension_semantics<parallel>], iteration_bounds = array<i64: 2>, scalar_prefetch = 0 : i64, scratch_operands = 0 : i64, tpu.core_type = #tpu.core_type<tc>, window_params = [{transform_indices = @transform_0, window_bounds = array<i64: 1, 8, 32>}, {pipeline_mode = #tpu.pipeline_mode<synchronous>, transform_indices = @transform_1, window_bounds = array<i64: 32, 48>}, {pipeline_mode = #tpu.pipeline_mode<synchronous>, transform_indices = @transform_2, window_bounds = array<i64: 1, 48>}, {transform_indices = @transform_3, window_bounds = array<i64: 1, 8, 48>}]} {
    %c0 = arith.constant 0 : index
    %c0_0 = arith.constant 0 : index
    %c0_1 = arith.constant 0 : index
    %0 = vector.load %arg1[%c0, %c0_0, %c0_1] : memref<1x8x32xf32, #tpu.memory_space<vmem>>, vector<1x8x32xf32>
    %1 = vector.shape_cast %0 : vector<1x8x32xf32> to vector<8x32xf32>
    %c0_2 = arith.constant 0 : index
    %c0_3 = arith.constant 0 : index
    %2 = vector.load %arg2[%c0_2, %c0_3] : memref<32x48xf32, #tpu.memory_space<vmem>>, vector<32x48xf32>
    %cst = arith.constant dense<0.000000e+00> : vector<8x48xf32>
    %3 = tpu.matmul %1, %2, %cst {dimension_numbers = #tpu.dot_dimension_numbers<[1], [0], [0], [1], [0, 0, 1, 1], [], []>} : vector<8x32xf32>, vector<32x48xf32>, vector<8x48xf32> -> vector<8x48xf32>
    %c0_4 = arith.constant 0 : index
    %c0_5 = arith.constant 0 : index
    %4 = vector.load %arg3[%c0_4, %c0_5] : memref<1x48xf32, #tpu.memory_space<vmem>>, vector<1x48xf32>
    %5 = vector.broadcast %4 : vector<1x48xf32> to vector<8x48xf32>
    %6 = arith.addf %3, %5 : vector<8x48xf32>
    %7 = vector.extract_strided_slice %6 {offsets = [0, 32], sizes = [8, 16], strides = [1, 1]} : vector<8x48xf32> to vector<8x16xf32>
    %c0_6 = arith.constant 0 : index
    %c0_7 = arith.constant 0 : index
    %c32 = arith.constant 32 : index
    %8 = vector.load %arg4[%c0_6, %c0_7, %c32] : memref<1x8x48xf32, #tpu.memory_space<vmem>>, vector<1x8x16xf32>
    %9 = vector.shape_cast %8 : vector<1x8x16xf32> to vector<8x16xf32>
    %10 = vector.shape_cast %7 : vector<8x16xf32> to vector<1x8x16xf32>
    tpu.vector_store %arg4[%c0_6, %c0_7, %c32], %10 {strides = array<i32>} : memref<1x8x48xf32, #tpu.memory_space<vmem>>, vector<1x8x16xf32>,
    %11 = vector.extract_strided_slice %6 {offsets = [0, 32], sizes = [8, 8], strides = [1, 1]} : vector<8x48xf32> to vector<8x8xf32>
    %12 = vector.extract_strided_slice %6 {offsets = [0, 40], sizes = [8, 8], strides = [1, 1]} : vector<8x48xf32> to vector<8x8xf32>
    %13 = vector.extract_strided_slice %6 {offsets = [0, 0], sizes = [8, 8], strides = [1, 1]} : vector<8x48xf32> to vector<8x8xf32>
    %cst_8 = arith.constant dense<0.000000e+00> : vector<8x8xf32>
    %14 = tpu.matmul %13, %11, %cst_8 {dimension_numbers = #tpu.dot_dimension_numbers<[1], [1], [0], [0], [0, 0, 1, 0], [], []>} : vector<8x8xf32>, vector<8x8xf32>, vector<8x8xf32> -> vector<8x8xf32>
    %cst_9 = arith.constant 0.353553385 : f32
    %15 = vector.broadcast %cst_9 : f32 to vector<8x8xf32>
    %16 = arith.mulf %14, %15 : vector<8x8xf32>
    %cst_10 = arith.constant dense<0xFF800000> : vector<8xf32>
    %17 = vector.multi_reduction <maximumf>, %16, %cst_10 [1] : vector<8x8xf32> to vector<8xf32>
    %18 = vector.shape_cast %17 : vector<8xf32> to vector<8x1xf32>
    %19 = vector.broadcast %18 : vector<8x1xf32> to vector<8x8xf32>
    %20 = arith.subf %16, %19 : vector<8x8xf32>
    %21 = math.exp %20 : vector<8x8xf32>
    %cst_11 = arith.constant dense<0.000000e+00> : vector<8xf32>
    %22 = vector.multi_reduction <add>, %21, %cst_11 [1] : vector<8x8xf32> to vector<8xf32>
    %23 = vector.shape_cast %22 : vector<8xf32> to vector<8x1xf32>
    %24 = tpu.reciprocal %23 : vector<8x1xf32> -> vector<8x1xf32>
    %25 = vector.broadcast %24 : vector<8x1xf32> to vector<8x8xf32>
    %26 = arith.mulf %21, %25 : vector<8x8xf32>
    %cst_12 = arith.constant dense<0.000000e+00> : vector<8x8xf32>
    %27 = tpu.matmul %26, %12, %cst_12 {dimension_numbers = #tpu.dot_dimension_numbers<[1], [0], [0], [1], [0, 0, 1, 1], [], []>} : vector<8x8xf32>, vector<8x8xf32>, vector<8x8xf32> -> vector<8x8xf32>
    %c0_13 = arith.constant 0 : index
    %c0_14 = arith.constant 0 : index
    %c0_15 = arith.constant 0 : index
    %28 = vector.load %arg4[%c0_13, %c0_14, %c0_15] : memref<1x8x48xf32, #tpu.memory_space<vmem>>, vector<1x8x8xf32>
    %29 = vector.shape_cast %28 : vector<1x8x8xf32> to vector<8x8xf32>
    %30 = vector.shape_cast %27 : vector<8x8xf32> to vector<1x8x8xf32>
    tpu.vector_store %arg4[%c0_13, %c0_14, %c0_15], %30 {strides = array<i32>} : memref<1x8x48xf32, #tpu.memory_space<vmem>>, vector<1x8x8xf32>,
    %31 = vector.extract_strided_slice %6 {offsets = [0, 8], sizes = [8, 8], strides = [1, 1]} : vector<8x48xf32> to vector<8x8xf32>
    %cst_16 = arith.constant dense<0.000000e+00> : vector<8x8xf32>
    %32 = tpu.matmul %31, %11, %cst_16 {dimension_numbers = #tpu.dot_dimension_numbers<[1], [1], [0], [0], [0, 0, 1, 0], [], []>} : vector<8x8xf32>, vector<8x8xf32>, vector<8x8xf32> -> vector<8x8xf32>
    %cst_17 = arith.constant 0.353553385 : f32
    %33 = vector.broadcast %cst_17 : f32 to vector<8x8xf32>
    %34 = arith.mulf %32, %33 : vector<8x8xf32>
    %cst_18 = arith.constant dense<0xFF800000> : vector<8xf32>
    %35 = vector.multi_reduction <maximumf>, %34, %cst_18 [1] : vector<8x8xf32> to vector<8xf32>
    %36 = vector.shape_cast %35 : vector<8xf32> to vector<8x1xf32>
    %37 = vector.broadcast %36 : vector<8x1xf32> to vector<8x8xf32>
    %38 = arith.subf %34, %37 : vector<8x8xf32>
    %39 = math.exp %38 : vector<8x8xf32>
    %cst_19 = arith.constant dense<0.000000e+00> : vector<8xf32>
    %40 = vector.multi_reduction <add>, %39, %cst_19 [1] : vector<8x8xf32> to vector<8xf32>
    %41 = vector.shape_cast %40 : vector<8xf32> to vector<8x1xf32>
    %42 = tpu.reciprocal %41 : vector<8x1xf32> -> vector<8x1xf32>
    %43 = vector.broadcast %42 : vector<8x1xf32> to vector<8x8xf32>
    %44 = arith.mulf %39, %43 : vector<8x8xf32>
    %cst_20 = arith.constant dense<0.000000e+00> : vector<8x8xf32>
    %45 = tpu.matmul %44, %12, %cst_20 {dimension_numbers = #tpu.dot_dimension_numbers<[1], [0], [0], [1], [0, 0, 1, 1], [], []>} : vector<8x8xf32>, vector<8x8xf32>, vector<8x8xf32> -> vector<8x8xf32>
    %c0_21 = arith.constant 0 : index
    %c0_22 = arith.constant 0 : index
    %c8 = arith.constant 8 : index
    %46 = vector.load %arg4[%c0_21, %c0_22, %c8] : memref<1x8x48xf32, #tpu.memory_space<vmem>>, vector<1x8x8xf32>
    %47 = vector.shape_cast %46 : vector<1x8x8xf32> to vector<8x8xf32>
    %48 = vector.shape_cast %45 : vector<8x8xf32> to vector<1x8x8xf32>
    tpu.vector_store %arg4[%c0_21, %c0_22, %c8], %48 {strides = array<i32>} : memref<1x8x48xf32, #tpu.memory_space<vmem>>, vector<1x8x8xf32>,
    %49 = vector.extract_strided_slice %6 {offsets = [0, 16], sizes = [8, 8], strides = [1, 1]} : vector<8x48xf32> to vector<8x8xf32>
    %cst_23 = arith.constant dense<0.000000e+00> : vector<8x8xf32>
    %50 = tpu.matmul %49, %11, %cst_23 {dimension_numbers = #tpu.dot_dimension_numbers<[1], [1], [0], [0], [0, 0, 1, 0], [], []>} : vector<8x8xf32>, vector<8x8xf32>, vector<8x8xf32> -> vector<8x8xf32>
    %cst_24 = arith.constant 0.353553385 : f32
    %51 = vector.broadcast %cst_24 : f32 to vector<8x8xf32>
    %52 = arith.mulf %50, %51 : vector<8x8xf32>
    %cst_25 = arith.constant dense<0xFF800000> : vector<8xf32>
    %53 = vector.multi_reduction <maximumf>, %52, %cst_25 [1] : vector<8x8xf32> to vector<8xf32>
    %54 = vector.shape_cast %53 : vector<8xf32> to vector<8x1xf32>
    %55 = vector.broadcast %54 : vector<8x1xf32> to vector<8x8xf32>
    %56 = arith.subf %52, %55 : vector<8x8xf32>
    %57 = math.exp %56 : vector<8x8xf32>
    %cst_26 = arith.constant dense<0.000000e+00> : vector<8xf32>
    %58 = vector.multi_reduction <add>, %57, %cst_26 [1] : vector<8x8xf32> to vector<8xf32>
    %59 = vector.shape_cast %58 : vector<8xf32> to vector<8x1xf32>
    %60 = tpu.reciprocal %59 : vector<8x1xf32> -> vector<8x1xf32>
    %61 = vector.broadcast %60 : vector<8x1xf32> to vector<8x8xf32>
    %62 = arith.mulf %57, %61 : vector<8x8xf32>
    %cst_27 = arith.constant dense<0.000000e+00> : vector<8x8xf32>
    %63 = tpu.matmul %62, %12, %cst_27 {dimension_numbers = #tpu.dot_dimension_numbers<[1], [0], [0], [1], [0, 0, 1, 1], [], []>} : vector<8x8xf32>, vector<8x8xf32>, vector<8x8xf32> -> vector<8x8xf32>
    %c0_28 = arith.constant 0 : index
    %c0_29 = arith.constant 0 : index
    %c16 = arith.constant 16 : index
    %64 = vector.load %arg4[%c0_28, %c0_29, %c16] : memref<1x8x48xf32, #tpu.memory_space<vmem>>, vector<1x8x8xf32>
    %65 = vector.shape_cast %64 : vector<1x8x8xf32> to vector<8x8xf32>
    %66 = vector.shape_cast %63 : vector<8x8xf32> to vector<1x8x8xf32>
    tpu.vector_store %arg4[%c0_28, %c0_29, %c16], %66 {strides = array<i32>} : memref<1x8x48xf32, #tpu.memory_space<vmem>>, vector<1x8x8xf32>,
    %67 = vector.extract_strided_slice %6 {offsets = [0, 24], sizes = [8, 8], strides = [1, 1]} : vector<8x48xf32> to vector<8x8xf32>
    %cst_30 = arith.constant dense<0.000000e+00> : vector<8x8xf32>
    %68 = tpu.matmul %67, %11, %cst_30 {dimension_numbers = #tpu.dot_dimension_numbers<[1], [1], [0], [0], [0, 0, 1, 0], [], []>} : vector<8x8xf32>, vector<8x8xf32>, vector<8x8xf32> -> vector<8x8xf32>
    %cst_31 = arith.constant 0.353553385 : f32
    %69 = vector.broadcast %cst_31 : f32 to vector<8x8xf32>
    %70 = arith.mulf %68, %69 : vector<8x8xf32>
    %cst_32 = arith.constant dense<0xFF800000> : vector<8xf32>
    %71 = vector.multi_reduction <maximumf>, %70, %cst_32 [1] : vector<8x8xf32> to vector<8xf32>
    %72 = vector.shape_cast %71 : vector<8xf32> to vector<8x1xf32>
    %73 = vector.broadcast %72 : vector<8x1xf32> to vector<8x8xf32>
    %74 = arith.subf %70, %73 : vector<8x8xf32>
    %75 = math.exp %74 : vector<8x8xf32>
    %cst_33 = arith.constant dense<0.000000e+00> : vector<8xf32>
    %76 = vector.multi_reduction <add>, %75, %cst_33 [1] : vector<8x8xf32> to vector<8xf32>
    %77 = vector.shape_cast %76 : vector<8xf32> to vector<8x1xf32>
    %78 = tpu.reciprocal %77 : vector<8x1xf32> -> vector<8x1xf32>
    %79 = vector.broadcast %78 : vector<8x1xf32> to vector<8x8xf32>
    %80 = arith.mulf %75, %79 : vector<8x8xf32>
    %cst_34 = arith.constant dense<0.000000e+00> : vector<8x8xf32>
    %81 = tpu.matmul %80, %12, %cst_34 {dimension_numbers = #tpu.dot_dimension_numbers<[1], [0], [0], [1], [0, 0, 1, 1], [], []>} : vector<8x8xf32>, vector<8x8xf32>, vector<8x8xf32> -> vector<8x8xf32>
    %c0_35 = arith.constant 0 : index
    %c0_36 = arith.constant 0 : index
    %c24 = arith.constant 24 : index
    %82 = vector.load %arg4[%c0_35, %c0_36, %c24] : memref<1x8x48xf32, #tpu.memory_space<vmem>>, vector<1x8x8xf32>
    %83 = vector.shape_cast %82 : vector<1x8x8xf32> to vector<8x8xf32>
    %84 = vector.shape_cast %81 : vector<8x8xf32> to vector<1x8x8xf32>
    tpu.vector_store %arg4[%c0_35, %c0_36, %c24], %84 {strides = array<i32>} : memref<1x8x48xf32, #tpu.memory_space<vmem>>, vector<1x8x8xf32>,
    return
  }
  func.func @transform_0(%arg0: i32) -> (i32, i32, i32) {
    %c0_i32 = arith.constant 0 : i32
    %c0_i32_0 = arith.constant 0 : i32
    %c0_i32_1 = arith.constant 0 : i32
    return %arg0, %c0_i32, %c0_i32_0 : i32, i32, i32
  }
  func.func @transform_1(%arg0: i32) -> (i32, i32) {
    %c0_i32 = arith.constant 0 : i32
    %c0_i32_0 = arith.constant 0 : i32
    %c0_i32_1 = arith.constant 0 : i32
    return %c0_i32, %c0_i32_0 : i32, i32
  }
  func.func @transform_2(%arg0: i32) -> (i32, i32) {
    %c0_i32 = arith.constant 0 : i32
    %c0_i32_0 = arith.constant 0 : i32
    %c0_i32_1 = arith.constant 0 : i32
    return %c0_i32, %c0_i32_0 : i32, i32
  }
  func.func @transform_3(%arg0: i32) -> (i32, i32, i32) {
    %c0_i32 = arith.constant 0 : i32
    %c0_i32_0 = arith.constant 0 : i32
    %c0_i32_1 = arith.constant 0 : i32
    return %arg0, %c0_i32, %c0_i32_0 : i32, i32, i32
  }
}

</mosaic_0001>

<bundles_post_ra>
// kernel: tpu_custom_call.1
= control target key start
LH: loop header
LB: loop body
LE: loop exit
PB: predicated region body
PF: predicated region fallthrough
CT: control target
= control target key end

     0   :  { %8 = vsyncpa [#allocation3], 0  ;;  %s1624_s0 = inlined_call_operand.hbm [shape: f32[2,8,32], index: 0, kind: input, shape index: {}]   ;;  %s1625_s1 = inlined_call_operand.hbm [shape: f32[32,48], index: 1, kind: input, shape index: {}]   ;;  %s1626_s2 = inlined_call_operand.vmem [shape: f32[1,48], index: 2, kind: input, shape index: {}]   ;;  %s1627_s3 = inlined_call_operand.hbm [shape: f32[2,8,48], index: 3, kind: output, shape index: {}]  }
   0x1   :  { %10 = vsyncpa [#allocation3 + $0x1], 0 }
   0x2   :  { %11 = vsyncpa [#allocation6], 0 }
   0x3   :  { %12 = vsyncpa [#allocation4], 0 }
   0x4   :  { %14 = vsyncpa [#allocation4 + $0x1], 0  ;;  %s1389_s12 = smov 0   ;;  %s1391_s13 = smov 0  }
   0x5   :  { %s1393_s14 = smov 0   ;;  %s1395_s15 = smov 0  }
   0x6 LB: > { %s1410_s16 = sadd.s32 4294967295, %s1352_s15   ;;  %s1045_s17 = sadd.s32 4294967294, %s1352_s15   ;;  %s1352_s15 = sphi %s1395_s15, %s1649_s15   ;;  %s1348_s14 = sphi %s1393_s14, %s1648_s14   ;;  %s1344_s13 = sphi %s1391_s13, %s1647_s13   ;;  %s1340_s12 = sphi %s1389_s12, %s1646_s12  }
   0x7   : > { %p40_p0 = scmp.ne.s32.totalorder %s1344_s13, %s1340_s12  ;;  %p1628_p1 = scmp.eq.s32.totalorder %s1410_s16, 0 }
   0x8   : > { %p112_p3 = scmp.eq.s32.totalorder %s1045_s17, 1  ;;  %p1046_p5 = scmp.ge.s32.totalorder %s1352_s15, 1 }
   0x9   : > { %p1419_p4 = por %p1628_p1, %p40_p0  ;;  %p119_p7 = scmp.lt.s32.totalorder %s1352_s15, 3 }
   0xa   : > { %p1424_p6 = por %p112_p3, %p40_p0  ;;  %s1354_s21 = smov [#allocation5]  }
   0xb   : > { %s1632_s18 = scalar_select %p1419_p4, 1, 0 }
   0xc   : > { %s1633_s19 = scalar_select %p1424_p6, 1, 0 }
   0xd   : > { %p1429_p8 = pnand %p1046_p5, %p119_p7  ;;  %s131_s22 = sshll.u32 %s1354_s21, 4  ;;  %s132_s22 = int_to_ptr.vmem [resolvable:$true] %s131_s22 }
   0xe   : > { %s1443_s24 = sadd.s32 1, %s1352_s15   ;;  %s27_s25 = sadd.s32 1, %s1348_s14 }
   0xf   : > { %s1634_s20 = scalar_select %p1429_p8, 1, 0 }
  0x10   : > { %p1153_p9 = pneg %p1429_p8  ;;  %s24_s26 = ssub.s32 %s1352_s15, %s1443_s24 }
  0x11   : > { %s1241_s27 = scalar_lea.vmem %s132_s22, 512  ;;  %p1249_p5 = scmp.lt.s32.totalorder %s132_s22, %s132_s22 }
  0x12   : > { %p1438_p11 = pnand %p1153_p9, %p1628_p1  ;;  %p1242_p13 = scmp.ne.s32.totalorder %s132_s22, %s1241_s27 }
  0x13   : > { %p1250_p7 = scmp.lt.s32.totalorder %s1241_s27, %s1241_s27 }
  0x14   : > { %p1232_p12 = pneg %p1438_p11 }
  0x15   : > { %p1251_p10 = por %p1250_p7, %p1249_p5 }
  0x16   : > { %p1244_p0 = pnand %p1242_p13, %p1232_p12 }
  0x18   : > { %p1245_p3 = pneg %p1244_p0 }
  0x1a   : > { %p1252_p2 = pnand %p1251_p10, %p1245_p3 }
  0x1c   : > { %1255 = shalt.err (!%p1252_p2)
}
  0x1d   : > { %s1355_s28 = smov 128   ;;  %s1356_s29 = smov 8  }
  0x1e   : > { %1156 = dma.hbm_to_vmem [thread:$0]  (!%p1438_p11), %s1625_s1, 512, %s132_s22, [#allocation6], %s1355_s28, %s1355_s28, %s1356_s29  }
  0x1f   : > { %p25_p9 = scmp.eq.s32.totalorder %s24_s26, 0  ;;  %p34_p12 = scmp.ne.s32.totalorder %s1348_s14, %s1344_s13 }
  0x20   : > { %p35_p10 = scmp.eq.s32.totalorder %s1352_s15, 0  ;;  %p1166_p2 = scmp.lt.s32.totalorder %s1352_s15, 2 }
  0x21   : > { %s1460_s5 = scalar_select %p25_p9, %s1348_s14, %s27_s25  }
  0x22   : > { %p36_p13 = por %p35_p10, %p34_p12  ;;  %p1636_p0 = scmp.eq.s32.totalorder %s1410_s16, 1 }
  0x23   : > { %s148_s7 = sand.u32 1, %s1348_s14   ;;  %s1050_s8 = sshll.u32 %s1352_s15, 7 }
  0x24   : > { %p1464_p3 = por %p1636_p0, %p34_p12  ;;  %s1049_s9 = sshll.u32 %s148_s7, 3 }
  0x25   : > { %s1473_s17 = scalar_lea.hbm %s1624_s0, %s1050_s8  ;;  %s152_s21 = scalar_lea.vmem [#allocation2], %s1049_s9 }
  0x26   : > { %s1637_s6 = scalar_select %p1464_p3, 1, 0 }
  0x27   : > { %s159_s22 = sshll.u32 %s152_s21, 4  ;;  %p1475_p11 = pnand %p1166_p2, %p36_p13  ;;  %s160_s22 = int_to_ptr.vmem [resolvable:$true] %s159_s22 }
  0x28   : > { %s149_s25 = scalar_lea.sflag [#allocation3], %s148_s7  ;;  %s1256_s26 = scalar_lea.hbm %s1473_s17, 128 }
  0x29   : > { %p1257_p5 = scmp.ne.s32.totalorder %s1473_s17, %s1256_s26  ;;  %p1258_p7 = pneg %p1475_p11 }
  0x2a   : > { %s1261_s29 = scalar_lea.hbm %s1624_s0, 256  ;;  %p1262_p10 = scmp.lt.s32.totalorder %s1473_s17, %s1624_s0 }
  0x2b   : > { %p1259_p9 = pnand %p1258_p7, %p1257_p5  ;;  %p1263_p2 = scmp.lt.s32.totalorder %s1261_s29, %s1256_s26 }
  0x2d   : > { %p1260_p12 = pneg %p1259_p9  ;;  %p1264_p13 = por %p1263_p2, %p1262_p10 }
  0x2f   : > { %p1265_p0 = pnand %p1264_p13, %p1260_p12 }
  0x31   : > { %1268 = shalt.err (!%p1265_p0)
}
  0x32   : > { %s1269_s8 = scalar_lea.vmem %s160_s22, 128  ;;  %s1357_s7 = smov [#allocation2]  }
  0x33   : > { %p1270_p1 = scmp.ne.s32.totalorder %s160_s22, %s1269_s8  ;;  %s1274_s9 = sshll.u32 %s1357_s7, 4  ;;  %s1275_s9 = int_to_ptr.vmem [resolvable:$false] %s1274_s9 }
  0x34   : > { %s1276_s10 = scalar_lea.vmem %s1275_s9, 256  ;;  %p1277_p5 = scmp.lt.s32.totalorder %s160_s22, %s1275_s9 }
  0x35   : > { %p1272_p6 = pnand %p1270_p1, %p1258_p7  ;;  %p1278_p9 = scmp.lt.s32.totalorder %s1276_s10, %s1269_s8 }
  0x37   : > { %p1273_p3 = pneg %p1272_p6  ;;  %p1279_p4 = por %p1278_p9, %p1277_p5 }
  0x39   : > { %p1280_p8 = pnand %p1279_p4, %p1273_p3 }
  0x3b   : > { %1283 = shalt.err (!%p1280_p8)
}
  0x3c   : > { %1160 = dma.hbm_to_vmem [thread:$0]  (!%p1475_p11), %s1473_s17, 128, %s160_s22, %s149_s25  }
  0x3d   : > { %p1639_p12 = scmp.ne.s32.totalorder %s1634_s20, 0 }
  0x3e   : > { %s1496_s11 = sand.u32 (!%p1639_p12), 1, %s1344_s13   ;;  %p1640_p1 = scmp.ne.s32.totalorder (!%p1639_p12), %s1632_s18, 0 }
  0x3f   : > { %168 = sbr.rel (%p1639_p12) target bundleno = 1235 (0x4d3), region = 32  ;;  %s1052_s21 = sshll.u32 (!%p1639_p12), %s1496_s11, 3 }
  0x40   : > { %s171_s26 = scalar_lea.sflag (!%p1639_p12), [#allocation3], %s1496_s11  ;;  %s174_s27 = scalar_lea.vmem (!%p1639_p12), [#allocation2], %s1052_s21 }
  0x44   : > { %1327 = dma.done.wait (%p1640_p1), %s171_s26, 128  }
  0x45   : > { %1329 = vsyncadd (%p1640_p1), %s171_s26, 4294967168  ;;  %p1641_p4 = scmp.eq.s32.totalorder %s1410_s16, 0 }
  0x47   : > { %1331 = dma.done.wait (%p1641_p4), [#allocation6], 512   ;;  %p1642_p6 = pmov %p1641_p4 }
  0x48   : > { %v1358_v0 = vmov 0.0   ;;  %vm1359_vm0 = vmmov 0   ;;  %v205_v1 = vld [vmem:[#allocation5 + $0x18] sm:$0xff]  ;;  %v204_v2 = vld [vmem:[#allocation5 + $0x10] sm:$0xff]  ;;  %v203_v3 = vld [vmem:[#allocation5 + $0x8] sm:$0xff]  ;;  %vm213_vm1 = vcmask 261120  }
  0x49   : > { %1333 = vsyncadd (%p1642_p6), [#allocation6], 4294966784  ;;  %1094 = vmatprep.subr.mxu0 %v1358_v0  ;;  %1102 = vmatprep.mubr.msk.f32.mxu0 %vm1359_vm0, %v1358_v0  ;;  %v202_v4 = vld [vmem:[#allocation5] sm:$0xff]  ;;  %v201_v5 = vld [vmem:[%s174_s27] sm:$0xff]  ;;  %vm287_vm2 = vcmask 392448   ;;  %s1360_s17 = smov 112  }
  0x4a   : > { %1105 = vmatprep.subr.mxu1 %v1358_v0  ;;  %1107 = vmatprep.mubr.msk.f32.mxu1 %vm1359_vm0, %v1358_v0  ;;  %v1055_v6 = vld [vmem:[%s1626_s2] ss:$0 sm:$0xff]  ;;  %s1361_s22 = smov 96   ;;  %s1531_s23 = scalar_lea.vmem [#allocation7], %s1052_s21  ;;  %vm292_vm3 = vcmask 64512   ;;  %vm619_vm4 = vcmask 130112  }
  0x4b   : > { %1095 = vmatpush3.msra.mxu0 %v205_v1  ;;  %s1362_s25 = smov 104   ;;  %s1363_s28 = smov 120   ;;  %vm784_vm5 = vcmask 195712   ;;  %vm949_vm6 = vcmask 261312  }
  0x4c   : > { %1096 = vmatprep.subr.mxu0 %v1358_v0  ;;  %s1364_s29 = smov 88   ;;  %s1365_s30 = smov 8  }
  0x4d   : > { %1097 = vmatpush3.msra.mxu0 %v204_v2  ;;  %s1366_s4 = smov 16   ;;  %s1367_s8 = smov 24  }
  0x4e   : > { %1098 = vmatprep.subr.mxu0 %v1358_v0  ;;  %s1070_s7 = sshll.u32 %s1410_s16, 7  ;;  %s965_s9 = sshll.u32 %s1531_s23, 4  ;;  %s966_s9 = int_to_ptr.vmem [resolvable:$true] %s965_s9 }
  0x4f   : > { %1099 = vmatpush3.msra.mxu0 %v203_v3  ;;  %s1586_s26 = scalar_lea.hbm %s1627_s3, %s1070_s7  ;;  %s952_s27 = scalar_lea.sflag [#allocation4], %s1496_s11 }
  0x50   : > { %1100 = vmatprep.subr.mxu0 %v1358_v0  ;;  %s1284_s18 = scalar_lea.vmem %s966_s9, 128  ;;  %p1643_p3 = scmp.ne.s32.totalorder %s1637_s6, 0 }
  0x51   : > { %1101 = vmatpush3.msra.mxu0 %v202_v4  ;;  %p1285_p8 = scmp.ne.s32.totalorder %s966_s9, %s1284_s18  ;;  %s1368_s20 = smov [#allocation7]  }
  0x52   : > { %1103 = vmatmul.mubr.msk.f32.vlgmr.msra.gmra.mxu0 %vm213_vm1, %v201_v5  ;;  %1115 = vmatprep.subr.mxu0 %v1358_v0 }
  0x53   : > { %1117 = vmatprep.mubr.msk.f32.mxu0 %vm1359_vm0, %v1358_v0  ;;  %p1286_p11 = pnand %p1285_p8, %p1643_p3 }
  0x55   : > { %p1287_p7 = pneg %p1286_p11 }
 0x112   : > { %v283_v7 = vpop.f32.mrf.mxu0 }
 0x113   : > { %v1525_v8 = vadd.f32 %v1055_v6, %v283_v7 }
 0x114   : > { %v1104_v9 = vpop.f32.mrf.mxu0 }
 0x115   : > { %621 = vrot.lane.b32.xlu1 %v1525_v8, %s1360_s17  ;;  %290 = vrot.lane.b32.xlu0 %v1525_v8, %s1361_s22  ;;  %288 = vst.msk [vmem:[%s1531_s23] sm:$0xff] %vm287_vm2, %v1525_v8  ;;  %s1288_s17 = sshll.u32 %s1368_s20, 4  ;;  %s1289_s17 = int_to_ptr.vmem [resolvable:$false] %s1288_s17 }
 0x116   : > { %s1290_s16 = scalar_lea.vmem %s1289_s17, 256  ;;  %p1291_p10 = scmp.lt.s32.totalorder %s966_s9, %s1289_s17 }
 0x117   : > { %p1292_p2 = scmp.lt.s32.totalorder %s1290_s16, %s1284_s18 }
 0x119   : > { %786 = vrot.lane.b32.xlu1 %v1525_v8, %s1362_s25  ;;  %456 = vrot.lane.b32.xlu0 %v1525_v8, %s1363_s28  ;;  %p1293_p13 = por %p1292_p2, %p1291_p10 }
 0x11b   : > { %p1294_p0 = pnand %p1293_p13, %p1287_p7 }
 0x187   : > { %v291_v10 = vpop.permute.xlu0 %290  ;;  %v622_v12 = vpop.permute.xlu1 %621 }
 0x188   : > { %1106 = vmatpush3.xpose.msk.msra.mxu1 %vm292_vm3, %v291_v10  ;;  %1116 = vmatpush3.xpose.msk.msra.mxu0 %vm292_vm3, %v291_v10 }
 0x189   : > { %1125 = vmatprep.subr.mxu0 %v1358_v0  ;;  %1110 = vmatprep.subr.mxu1 %v1358_v0 }
 0x18b   : > { %1108 = vmatmul.mubr.msk.f32.vlgmr.msra.gmra.mxu1 %vm292_vm3, %v1525_v8  ;;  %v457_v11 = vpop.permute.xlu0 %456  ;;  %v787_v13 = vpop.permute.xlu1 %786 }
 0x18c   : > { %1118 = vmatmul.mubr.msk.f32.vlgmr.msra.gmra.mxu0 %vm292_vm3, %v457_v11  ;;  %1112 = vmatprep.mubr.msk.f32.mxu1 %vm1359_vm0, %v1358_v0 }
 0x18d   : > { %1126 = vmatpush3.xpose.msk.msra.mxu0 %vm292_vm3, %v291_v10  ;;  %1127 = vmatprep.mubr.msk.f32.mxu0 %vm1359_vm0, %v1358_v0 }
 0x18e   : > { %1135 = vmatprep.subr.mxu0 %v1358_v0 }
 0x190   : > { %1128 = vmatmul.mubr.msk.f32.vlgmr.msra.gmra.mxu0 %vm292_vm3, %v622_v12 }
 0x191   : > { %1136 = vmatpush3.xpose.msk.msra.mxu0 %vm292_vm3, %v291_v10  ;;  %1137 = vmatprep.mubr.msk.f32.mxu0 %vm1359_vm0, %v1358_v0 }
 0x194   : > { %1138 = vmatmul.mubr.msk.f32.vlgmr.msra.gmra.mxu0 %vm292_vm3, %v787_v13 }
 0x24b   : > { %v363_v14 = vpop.f32.mrf.mxu1 }
 0x24c   : > { %v367_v15 = vmul.f32 0.35355338, %v363_v14  ;;  %v526_v16 = vpop.f32.mrf.mxu0 }
 0x24d   : > { %v530_v17 = vmul.f32 0.35355338, %v526_v16  ;;  %v1109_v18 = vpop.f32.mrf.mxu1 }
 0x24e   : > { %v1119_v19 = vpop.f32.mrf.mxu0  ;;  %v368_v20 = vsel %vm292_vm3, %v367_v15, -inf }
 0x24f   : > { %369 = vmax.xlane.f32.xlu0 %v368_v20  ;;  %v531_v21 = vsel %vm292_vm3, %v530_v17, -inf }
 0x250   : > { %532 = vmax.xlane.f32.xlu1 %v531_v21  ;;  %v691_v22 = vpop.f32.mrf.mxu0 }
 0x251   : > { %v695_v23 = vmul.f32 0.35355338, %v691_v22 }
 0x252   : > { %v1129_v24 = vpop.f32.mrf.mxu0 }
 0x253   : > { %v696_v25 = vsel %vm292_vm3, %v695_v23, -inf }
 0x254   : > { %697 = vmax.xlane.f32.xlu0 %v696_v25  ;;  %v856_v26 = vpop.f32.mrf.mxu0 }
 0x255   : > { %v860_v27 = vmul.f32 0.35355338, %v856_v26 }
 0x256   : > { %v1139_v28 = vpop.f32.mrf.mxu0 }
 0x257   : > { %v861_v29 = vsel %vm292_vm3, %v860_v27, -inf }
 0x258   : > { %862 = vmax.xlane.f32.xlu0 %v861_v29 }
 0x2d8   : > { %v370_v30 = vpop.xlane.xlu0 %369 }
 0x2d9   : > { %v371_v31 = vsub.f32 %v367_v15, %v370_v30  ;;  %v533_v32 = vpop.xlane.xlu1 %532 }
 0x2da   : > { %v534_v33 = vsub.f32 %v530_v17, %v533_v32 }
 0x2db   : > { %v372_v34 = vmul.f32 1.442695, %v371_v31 }
 0x2dc   : > { %v535_v35 = vmul.f32 1.442695, %v534_v33 }
 0x2dd   : > { %1214 = vpow2.f32 %v372_v34  ;;  %v698_v36 = vpop.xlane.xlu0 %697 }
 0x2de   : > { %1216 = vpow2.f32 %v535_v35  ;;  %v699_v37 = vsub.f32 %v695_v23, %v698_v36 }
 0x2e0   : > { %v700_v38 = vmul.f32 1.442695, %v699_v37 }
 0x2e1   : > { %v863_v39 = vpop.xlane.xlu0 %862 }
 0x2e2   : > { %1218 = vpow2.f32 %v700_v38  ;;  %v864_v40 = vsub.f32 %v860_v27, %v863_v39 }
 0x2e4   : > { %v865_v41 = vmul.f32 1.442695, %v864_v40 }
 0x2e6   : > { %1220 = vpow2.f32 %v865_v41 }
 0x2ea   : > { %v1215_v42 = vpop.eup %1214 }
 0x2eb   : > { %v1217_v43 = vpop.eup %1216  ;;  %v374_v44 = vsel %vm292_vm3, %v1215_v42, 0.0 }
 0x2ec   : > { %375 = vadd.xlane.f32.xlu1 %v374_v44  ;;  %v537_v45 = vsel %vm292_vm3, %v1217_v43, 0.0 }
 0x2ed   : > { %538 = vadd.xlane.f32.xlu0 %v537_v45 }
 0x2ef   : > { %v1219_v46 = vpop.eup %1218 }
 0x2f0   : > { %v702_v47 = vsel %vm292_vm3, %v1219_v46, 0.0 }
 0x2f1   : > { %703 = vadd.xlane.f32.xlu1 %v702_v47 }
 0x2f3   : > { %v1221_v48 = vpop.eup %1220 }
 0x2f4   : > { %v867_v49 = vsel %vm292_vm3, %v1221_v48, 0.0 }
 0x2f5   : > { %868 = vadd.xlane.f32.xlu0 %v867_v49 }
 0x302   : > { %379 = vrot.lane.b32.xlu1 %v1525_v8, %s1364_s29 }
 0x375   : > { %v376_v50 = vpop.xlane.xlu1 %375 }
 0x376   : > { %1222 = vrcp.f32 %v376_v50  ;;  %v539_v51 = vpop.xlane.xlu0 %538 }
 0x377   : > { %1224 = vrcp.f32 %v539_v51 }
 0x37a   : > { %v704_v52 = vpop.xlane.xlu1 %703 }
 0x37b   : > { %1226 = vrcp.f32 %v704_v52 }
 0x37e   : > { %v380_v53 = vpop.permute.xlu1 %379  ;;  %v869_v54 = vpop.xlane.xlu0 %868 }
 0x37f   : > { %1111 = vmatpush3.msra.mxu1 %v380_v53  ;;  %1228 = vrcp.f32 %v869_v54 }
 0x380   : > { %1120 = vmatprep.subr.mxu1 %v1358_v0 }
 0x383   : > { %v1223_v55 = vpop.eup %1222 }
 0x384   : > { %v378_v56 = vmul.f32 %v1223_v55, %v1215_v42  ;;  %v1225_v57 = vpop.eup %1224 }
 0x385   : > { %v541_v58 = vmul.f32 %v1225_v57, %v1217_v43 }
 0x386   : > { %1113 = vmatmul.mubr.msk.f32.vlgmr.msra.gmra.mxu1 %vm292_vm3, %v378_v56 }
 0x387   : > { %1121 = vmatpush3.msra.mxu1 %v380_v53  ;;  %1122 = vmatprep.mubr.msk.f32.mxu1 %vm1359_vm0, %v1358_v0 }
 0x388   : > { %1130 = vmatprep.subr.mxu1 %v1358_v0  ;;  %v1227_v59 = vpop.eup %1226 }
 0x389   : > { %v706_v60 = vmul.f32 %v1227_v59, %v1219_v46 }
 0x38a   : > { %1123 = vmatmul.mubr.msk.f32.vlgmr.msra.gmra.mxu1 %vm292_vm3, %v541_v58 }
 0x38b   : > { %1131 = vmatpush3.msra.mxu1 %v380_v53  ;;  %1132 = vmatprep.mubr.msk.f32.mxu1 %vm1359_vm0, %v1358_v0 }
 0x38c   : > { %1140 = vmatprep.subr.mxu1 %v1358_v0  ;;  %v1229_v61 = vpop.eup %1228 }
 0x38d   : > { %v871_v62 = vmul.f32 %v1229_v61, %v1221_v48 }
 0x38e   : > { %1133 = vmatmul.mubr.msk.f32.vlgmr.msra.gmra.mxu1 %vm292_vm3, %v706_v60 }
 0x38f   : > { %1141 = vmatpush3.msra.mxu1 %v380_v53  ;;  %1142 = vmatprep.mubr.msk.f32.mxu1 %vm1359_vm0, %v1358_v0 }
 0x392   : > { %1143 = vmatmul.mubr.msk.f32.vlgmr.msra.gmra.mxu1 %vm292_vm3, %v871_v62 }
 0x446   : > { %v451_v63 = vpop.f32.mrf.mxu1 }
 0x447   : > { %455 = vst.msk [vmem:[%s1531_s23] sm:$0xff] %vm292_vm3, %v451_v63 }
 0x448   : > { %v1114_v1 = vpop.f32.mrf.mxu1 }
 0x44a   : > { %v611_v2 = vpop.f32.mrf.mxu1 }
 0x44b   : > { %616 = vrot.lane.b32.xlu0 %v611_v2, %s1365_s30 }
 0x44c   : > { %v1124_v3 = vpop.f32.mrf.mxu1 }
 0x44e   : > { %v776_v4 = vpop.f32.mrf.mxu1 }
 0x44f   : > { %781 = vrot.lane.b32.xlu1 %v776_v4, %s1366_s4 }
 0x450   : > { %v1134_v5 = vpop.f32.mrf.mxu1 }
 0x452   : > { %v941_v0 = vpop.f32.mrf.mxu1 }
 0x453   : > { %946 = vrot.lane.b32.xlu1 %v941_v0, %s1367_s8 }
 0x454   : > { %v1144_v6 = vpop.f32.mrf.mxu1 }
 0x4bd   : > { %v617_v7 = vpop.permute.xlu0 %616 }
 0x4be   : > { %620 = vst.msk [vmem:[%s1531_s23] sm:$0xff] %vm619_vm4, %v617_v7 }
 0x4c1   : > { %v782_v8 = vpop.permute.xlu1 %781 }
 0x4c2   : > { %785 = vst.msk [vmem:[%s1531_s23] sm:$0xff] %vm784_vm5, %v782_v8 }
 0x4c5   : > { %v947_v9 = vpop.permute.xlu1 %946 }
 0x4c6   : > { %950 = vst.msk [vmem:[%s1531_s23] sm:$0xff] %vm949_vm6, %v947_v9 }
 0x4c7   : > { %1297 = shalt.err (!%p1294_p0)
}
 0x4c8   : > { %s1298_s22 = scalar_lea.hbm %s1586_s26, 128  ;;  %s1302_s25 = scalar_lea.hbm %s1627_s3, 256 }
 0x4c9   : > { %p1299_p5 = scmp.ne.s32.totalorder %s1586_s26, %s1298_s22  ;;  %p1303_p1 = scmp.lt.s32.totalorder %s1586_s26, %s1627_s3 }
 0x4ca   : > { %p1304_p4 = scmp.lt.s32.totalorder %s1302_s25, %s1298_s22 }
 0x4cb   : > { %p1300_p9 = pnand %p1299_p5, %p1643_p3 }
 0x4cc   : > { %p1305_p6 = por %p1304_p4, %p1303_p1 }
 0x4cd   : > { %p1301_p12 = pneg %p1300_p9 }
 0x4cf   : > { %p1306_p8 = pnand %p1305_p6, %p1301_p12 }
 0x4d1   : > { %1309 = shalt.err (!%p1306_p8)
}
 0x4d2   : > { %1151 = dma.vmem_to_hbm [thread:$0]  (%p1643_p3), %s966_s9, 128, %s1586_s26, %s952_s27  }
 0x4d3 PF: > { %s977_s30 = sand.u32 1, %s1340_s12   ;;  %p1644_p11 = scmp.ne.s32.totalorder %s1633_s19, 0 }
 0x4d4   : > { %p1645_p7 = scmp.ge.s32.totalorder %s1352_s15, 2  ;;  %s978_s4 = scalar_lea.sflag [#allocation4], %s977_s30 }
 0x4d6   : > { %p1162_p10 = pnand %p1645_p7, %p1644_p11 }
 0x4d8   : > { %p1163_p2 = pneg %p1162_p10 }
 0x4da   : > { %1335 = dma.done.wait (%p1163_p2), %s978_s4, 128  }
 0x4db   : > { %1337 = vsyncadd (%p1163_p2), %s978_s4, 4294967168  ;;  %p17_p13 = scmp.ge.s32.totalorder %s1443_s24, 4   ;;  %s1646_s12 = smov %s1344_s13 }
 0x4dc   : > { %s1647_s13 = smov %s1348_s14  ;;  %s1648_s14 = smov %s1460_s5 }
 0x4dd   : > { %s1649_s15 = smov %s1443_s24  ;;  %19 = sbr.rel (!%p17_p13) target bundleno = 6 (0x6), region = 81 }
 0x4e2   :  { %983 = vsyncpa [#allocation3], 1 }
 0x4e3   :  { %985 = vsyncpa [#allocation3 + $0x1], 1 }
 0x4e4   :  { %986 = vsyncpa [#allocation6], 1 }
 0x4e5   :  { %987 = vsyncpa [#allocation4], 1 }
 0x4e6   :  { %989 = vsyncpa [#allocation4 + $0x1], 1 }

</bundles_post_ra>
